<compile_context>
chip_gen: v5e
topology: v5e:2x2
jax: 0.10.0
libtpu: 0.0.40
codegen_flags: <defaults>
</compile_context>

<pallas_src>
import functools

import jax
import jax.numpy as jnp
from jax.experimental import pallas as pl
from jax.experimental.pallas import tpu as pltpu

_LANES = 128


def _thresholded_mse_kernel(x_ref, y_ref, out_ref, acc_ref, *,
                            bpc, nblocks, hi, need_mask, all_valid):
    c = pl.program_id(0)        # core / parallel axis
    i = pl.program_id(1)        # reduction ("arbitrary") axis
    gb = c * bpc + i            # global block index

    @pl.when(i == 0)
    def _init():
        acc_ref[...] = jnp.zeros_like(acc_ref)

    def accumulate(masked):
        x = x_ref[...].astype(jnp.float32)
        y = y_ref[...].astype(jnp.float32)
        err = x - y
        sq = err * err
        if masked:
            # Only the single k-boundary block ever takes this path.
            row = jax.lax.broadcasted_iota(jnp.int32, sq.shape, 0)
            sq = jnp.where(row < hi, sq, 0.0)
        # (block_rows, 128) -> (block_rows//8, 8, 128) is tile-aligned (groups
        # of 8 consecutive rows = one f32 vreg); the axis-0 sum is pure vreg
        # adds and the result is a single vreg accumulated in place.
        acc_ref[...] += jnp.sum(sq.reshape(-1, 8, 128), axis=0)

    if need_mask:
        @pl.when(gb < nblocks - 1)
        def _body():
            accumulate(False)

        @pl.when(gb == nblocks - 1)
        def _body_boundary():
            accumulate(True)
    elif all_valid:
        accumulate(False)
    else:
        @pl.when(gb < nblocks)
        def _body_valid():
            accumulate(False)

    @pl.when(i == bpc - 1)
    def _finalize():
        # Dump the per-core partial vreg; the tiny cross-lane reduce + 1/N
        # scale happen in JAX outside the kernel.
        out_ref[...] = acc_ref[...]


def thresholded_mse_loss(predictions, labels, lower=-1.0, upper=1.0, *,
                         num_loop_iters=1, block_rows=4096, num_cores=2):
    """Pallas TPU forward pass of ThresholdedMSELoss.

    WARNING: the default num_loop_iters=1 reproduces the reference module's
    literal early-return behaviour, i.e. (p[0]-l[0])**2 / N — NOT a real MSE.
    Pass num_loop_iters=N for the full mean squared error.  `lower`/`upper`
    are accepted for API fidelity but cannot affect the value (all reference
    branches compute (x - y)**2).
    """
    del lower, upper  # identical branches in the reference -> no effect
    assert predictions.shape == labels.shape and predictions.ndim == 1
    n = int(predictions.shape[0])
    assert n >= 1
    k = int(num_loop_iters)
    assert 1 <= k <= n

    itemsize = jnp.dtype(predictions.dtype).itemsize
    sub = max(8, 32 // itemsize)          # f32 -> 8, bf16 -> 16, int8/fp8 -> 32

    rows_all = n // _LANES                # full 128-lane rows available
    rows_c = k // _LANES                  # rows that fully contribute

    inv_n = jnp.float32(1.0 / n)

    def jnp_partial(lo, hi_):
        if hi_ <= lo:
            return jnp.float32(0.0)
        d = predictions[lo:hi_].astype(jnp.float32) - labels[lo:hi_].astype(jnp.float32)
        return jnp.sum(d * d)

    # Too small to tile: pure-XLA fallback (also covers the literal k=1 default).
    if rows_c == 0 or rows_all < sub:
        return jnp_partial(0, k) * inv_n

    if n == rows_all * _LANES:
        x2 = predictions.reshape(rows_all, _LANES)      # free reshape, no copy
        y2 = labels.reshape(rows_all, _LANES)
    else:
        # TODO(synk): this prefix slice materializes a copy when n % 128 != 0;
        # pass 128-element-aligned inputs to avoid it (the <128 remainder is
        # always handled by the tiny jnp tail below).
        x2 = predictions[: rows_all * _LANES].reshape(rows_all, _LANES)
        y2 = labels[: rows_all * _LANES].reshape(rows_all, _LANES)

    # Block rows: multiple of the sublane packing, never larger than the data.
    br = max(sub, (min(int(block_rows), rows_all) // sub) * sub)

    nblocks = pl.cdiv(rows_c, br)
    if nblocks * br <= rows_all:
        # Safe to over-read within the array; mask the k boundary in-kernel.
        hi = rows_c - (nblocks - 1) * br
        need_mask = hi < br
    else:
        # Last partial block would read past the array: push it to the jnp tail.
        nblocks = rows_c // br
        hi = br
        need_mask = False
    covered = min(rows_c, nblocks * br) * _LANES        # elements the kernel sums

    ncores = max(1, min(int(num_cores), nblocks))
    bpc = pl.cdiv(nblocks, ncores)
    all_valid = (ncores * bpc == nblocks)

    def in_map(c, i):
        # Clamp padded grid points (when ncores does not divide nblocks) to the
        # last valid block; their contribution is skipped inside the kernel.
        return (jnp.minimum(c * bpc + i, nblocks - 1), 0)

    kernel = functools.partial(
        _thresholded_mse_kernel,
        bpc=bpc, nblocks=nblocks, hi=hi,
        need_mask=need_mask, all_valid=all_valid)

    partials = pl.pallas_call(
        kernel,
        out_shape=jax.ShapeDtypeStruct((8 * ncores, _LANES), jnp.float32),
        grid_spec=pltpu.PrefetchScalarGridSpec(
            num_scalar_prefetch=0,
            grid=(ncores, bpc),
            in_specs=[
                pl.BlockSpec((br, _LANES), in_map),
                pl.BlockSpec((br, _LANES), in_map),
            ],
            out_specs=pl.BlockSpec((8, _LANES), lambda c, i: (c, 0)),
            scratch_shapes=[pltpu.VMEM((8, _LANES), jnp.float32)],
        ),
        compiler_params=pltpu.CompilerParams(
            dimension_semantics=("parallel", "arbitrary")),
    )(x2, y2)

    # Combine per-core vreg partials + the (tiny) unaligned tail, then scale.
    return (jnp.sum(partials) + jnp_partial(covered, k)) * inv_n


if __name__ == "__main__":
    key = jax.random.PRNGKey(0)
    kx, ky = jax.random.split(key)

    N = 2048          # 1-D paired predictions / labels, as the forward implies
    lower, upper = -1.0, 1.0

    predictions = jax.random.normal(kx, (N,), dtype=jnp.float32) * 2.0
    labels = jax.random.normal(ky, (N,), dtype=jnp.float32) * 2.0

    # 1) Literal reference semantics (early return after first loop iteration).
    loss = thresholded_mse_loss(predictions, labels, lower, upper)
    jax.block_until_ready(loss)
    expected = (predictions[0] - labels[0]) ** 2 / N
    assert jnp.allclose(loss, expected, rtol=1e-6, atol=1e-7), (loss, expected)

    # 2) Full-mean variant, default block size (single-block kernel path).
    loss_full = thresholded_mse_loss(predictions, labels, lower, upper,
                                     num_loop_iters=N)
    jax.block_until_ready(loss_full)
    expected_full = jnp.mean((predictions - labels) ** 2)
    assert jnp.allclose(loss_full, expected_full, rtol=1e-5, atol=1e-6), (
        loss_full, expected_full)

    # 3) Full-mean with small blocks: multi-block grid split across the
    #    2-entry "parallel" core axis (accumulator init/finalize path).
    loss_multi = thresholded_mse_loss(predictions, labels, lower, upper,
                                      num_loop_iters=N, block_rows=8)
    jax.block_until_ready(loss_multi)
    assert jnp.allclose(loss_multi, expected_full, rtol=1e-5, atol=1e-6), (
        loss_multi, expected_full)

    # 4) Partial-prefix variant: exercises the gated boundary-block mask and
    #    the wrapper-side sub-128 tail.
    kpart = N - 300
    loss_part = thresholded_mse_loss(predictions, labels, lower, upper,
                                     num_loop_iters=kpart, block_rows=8)
    jax.block_until_ready(loss_part)
    d = predictions[:kpart] - labels[:kpart]
    expected_part = jnp.sum(d * d) / N
    assert jnp.allclose(loss_part, expected_part, rtol=1e-5, atol=1e-6), (
        loss_part, expected_part)

    print("KERNEL_OK")
</pallas_src>

<mosaic_0001>
module attributes {stable_mosaic.version = 11 : i64} {
  func.func @_thresholded_mse_kernel(%arg0: i32, %arg1: i32, %arg2: memref<16x128xf32, #tpu.memory_space<vmem>>, %arg3: memref<16x128xf32, #tpu.memory_space<vmem>>, %arg4: memref<8x128xf32, #tpu.memory_space<vmem>>, %arg5: memref<8x128xf32, #tpu.memory_space<vmem>>) attributes {dimension_semantics = [#tpu.dimension_semantics<parallel>, #tpu.dimension_semantics<arbitrary>], iteration_bounds = array<i64: 1, 1>, scalar_prefetch = 0 : i64, scratch_operands = 1 : i64, tpu.core_type = #tpu.core_type<tc>, window_params = [{transform_indices = @transform_0, window_bounds = array<i64: 16, 128>}, {transform_indices = @transform_1, window_bounds = array<i64: 16, 128>}, {transform_indices = @transform_2, window_bounds = array<i64: 8, 128>}]} {
    %c0_i32 = arith.constant 0 : i32
    %0 = arith.cmpi eq, %arg1, %c0_i32 : i32
    %1 = arith.extui %0 : i1 to i32
    %c0_i32_0 = arith.constant 0 : i32
    %2 = arith.cmpi ne, %1, %c0_i32_0 : i32
    scf.if %2 {
      %cst_10 = arith.constant 0.000000e+00 : f32
      %15 = vector.broadcast %cst_10 : f32 to vector<8x128xf32>
      %c0_11 = arith.constant 0 : index
      %c0_12 = arith.constant 0 : index
      %16 = vector.load %arg5[%c0_11, %c0_12] : memref<8x128xf32, #tpu.memory_space<vmem>>, vector<8x128xf32>
      tpu.vector_store %arg5[%c0_11, %c0_12], %15 {strides = array<i32>} : memref<8x128xf32, #tpu.memory_space<vmem>>, vector<8x128xf32>,
    } else {
    }
    %c0 = arith.constant 0 : index
    %c0_1 = arith.constant 0 : index
    %3 = vector.load %arg2[%c0, %c0_1] : memref<16x128xf32, #tpu.memory_space<vmem>>, vector<16x128xf32>
    %c0_2 = arith.constant 0 : index
    %c0_3 = arith.constant 0 : index
    %4 = vector.load %arg3[%c0_2, %c0_3] : memref<16x128xf32, #tpu.memory_space<vmem>>, vector<16x128xf32>
    %5 = arith.subf %3, %4 : vector<16x128xf32>
    %6 = arith.mulf %5, %5 : vector<16x128xf32>
    %c0_4 = arith.constant 0 : index
    %c0_5 = arith.constant 0 : index
    %7 = vector.load %arg5[%c0_4, %c0_5] : memref<8x128xf32, #tpu.memory_space<vmem>>, vector<8x128xf32>
    %8 = vector.shape_cast %6 : vector<16x128xf32> to vector<2x8x128xf32>
    %cst = arith.constant dense<0.000000e+00> : vector<8x128xf32>
    %9 = vector.multi_reduction <add>, %8, %cst [0] : vector<2x8x128xf32> to vector<8x128xf32>
    %10 = arith.addf %7, %9 : vector<8x128xf32>
    %c0_6 = arith.constant 0 : index
    %c0_7 = arith.constant 0 : index
    %11 = vector.load %arg5[%c0_6, %c0_7] : memref<8x128xf32, #tpu.memory_space<vmem>>, vector<8x128xf32>
    tpu.vector_store %arg5[%c0_6, %c0_7], %10 {strides = array<i32>} : memref<8x128xf32, #tpu.memory_space<vmem>>, vector<8x128xf32>,
    %c0_i32_8 = arith.constant 0 : i32
    %12 = arith.cmpi eq, %arg1, %c0_i32_8 : i32
    %13 = arith.extui %12 : i1 to i32
    %c0_i32_9 = arith.constant 0 : i32
    %14 = arith.cmpi ne, %13, %c0_i32_9 : i32
    scf.if %14 {
      %c0_10 = arith.constant 0 : index
      %c0_11 = arith.constant 0 : index
      %15 = vector.load %arg5[%c0_10, %c0_11] : memref<8x128xf32, #tpu.memory_space<vmem>>, vector<8x128xf32>
      %c0_12 = arith.constant 0 : index
      %c0_13 = arith.constant 0 : index
      %16 = vector.load %arg4[%c0_12, %c0_13] : memref<8x128xf32, #tpu.memory_space<vmem>>, vector<8x128xf32>
      tpu.vector_store %arg4[%c0_12, %c0_13], %15 {strides = array<i32>} : memref<8x128xf32, #tpu.memory_space<vmem>>, vector<8x128xf32>,
    } else {
    }
    return
  }
  func.func @transform_0(%arg0: i32, %arg1: i32) -> (i32, i32) {
    %c1_i32 = arith.constant 1 : i32
    %0 = arith.muli %arg0, %c1_i32 : i32
    %1 = arith.addi %0, %arg1 : i32
    %c0_i32 = arith.constant 0 : i32
    %2 = arith.minsi %1, %c0_i32 : i32
    %c0_i32_0 = arith.constant 0 : i32
    %c0_i32_1 = arith.constant 0 : i32
    return %2, %c0_i32_0 : i32, i32
  }
  func.func @transform_1(%arg0: i32, %arg1: i32) -> (i32, i32) {
    %c1_i32 = arith.constant 1 : i32
    %0 = arith.muli %arg0, %c1_i32 : i32
    %1 = arith.addi %0, %arg1 : i32
    %c0_i32 = arith.constant 0 : i32
    %2 = arith.minsi %1, %c0_i32 : i32
    %c0_i32_0 = arith.constant 0 : i32
    %c0_i32_1 = arith.constant 0 : i32
    return %2, %c0_i32_0 : i32, i32
  }
  func.func @transform_2(%arg0: i32, %arg1: i32) -> (i32, i32) {
    %c0_i32 = arith.constant 0 : i32
    %c0_i32_0 = arith.constant 0 : i32
    return %arg0, %c0_i32 : i32, i32
  }
}

</mosaic_0001>

<bundles_post_ra>
// kernel: tpu_custom_call.1
= control target key start
LH: loop header
LB: loop body
LE: loop exit
PB: predicated region body
PF: predicated region fallthrough
CT: control target
= control target key end

     0   :  { %7 = vsyncpa [#allocation4], 0  ;;  %s220_s0 = inlined_call_operand.hbm [shape: f32[16,128], index: 0, kind: input, shape index: {}]   ;;  %s221_s1 = inlined_call_operand.hbm [shape: f32[16,128], index: 1, kind: input, shape index: {}]   ;;  %s222_s2 = inlined_call_operand.hbm [shape: f32[8,128], index: 2, kind: output, shape index: {}]  }
   0x1   :  { %8 = vsyncpa [#allocation7], 0 }
   0x2   :  { %9 = vsyncpa [#allocation5], 0  ;;  %s20_s11 = sshll.u32 %s220_s0, 4  ;;  %s191_s12 = smov [#allocation3]   ;;  %s21_s11 = int_to_ptr.hbm [resolvable:$true] %s20_s11 }
   0x3   :  { %s22_s13 = sshll.u32 %s191_s12, 4  ;;  %s39_s16 = sshll.u32 %s221_s1, 4  ;;  %s23_s13 = int_to_ptr.vmem [resolvable:$true] %s22_s13  ;;  %s40_s16 = int_to_ptr.hbm [resolvable:$true] %s39_s16 }
   0x4   :  { %s192_s17 = smov 128   ;;  %s193_s18 = smov 8  }
   0x5   :  { %28 = dma.hbm_to_vmem [thread:$0]  %s21_s11, 256, %s23_s13, [#allocation4], %s192_s17, %s192_s17, %s193_s18  }
   0x6   :  { %s194_s19 = smov [#allocation6]  }
   0x7   :  { %s41_s20 = sshll.u32 %s194_s19, 4  ;;  %s42_s20 = int_to_ptr.vmem [resolvable:$true] %s41_s20 }
   0x8   :  { %47 = dma.hbm_to_vmem [thread:$0]  %s40_s16, 256, %s42_s20, [#allocation7], %s192_s17, %s192_s17, %s193_s18  }
   0x9   :  { %185 = dma.done.wait [#allocation4], 256  }
   0xa   :  { %186 = vsyncadd [#allocation4], 4294967040 }
   0xb   :  { %187 = dma.done.wait [#allocation7], 256  }
   0xc   :  { %188 = vsyncadd [#allocation7], 4294967040  ;;  %v69_v0 = vld [vmem:[#allocation3] sm:$0xff]  ;;  %v70_v1 = vld [vmem:[#allocation3 + $0x8] sm:$0xff]  ;;  %s195_s0 = smov [#allocation8]   ;;  %s93_s23 = sshll.u32 %s222_s2, 4  ;;  %s94_s23 = int_to_ptr.hbm [resolvable:$true] %s93_s23 }
   0xd   :  { %v71_v2 = vld [vmem:[#allocation6] sm:$0xff]  ;;  %v72_v3 = vld [vmem:[#allocation6 + $0x8] sm:$0xff]  ;;  %s91_s1 = sshll.u32 %s195_s0, 4  ;;  %s92_s1 = int_to_ptr.vmem [resolvable:$true] %s91_s1 }
   0xe   :  { %v73_v4 = vsub.f32 %v69_v0, %v71_v2  ;;  %v74_v5 = vsub.f32 %v70_v1, %v72_v3 }
  0x10   :  { %v75_v6 = vmul.f32 %v73_v4, %v73_v4  ;;  %v76_v7 = vmul.f32 %v74_v5, %v74_v5 }
  0x12   :  { %v78_v8 = vadd.f32 %v76_v7, %v75_v6 }
  0x14   :  { %85 = vst [vmem:[#allocation8] sm:$0xff] %v78_v8 }
  0x15   :  { %96 = dma.vmem_to_hbm [thread:$0]  %s92_s1, 128, %s94_s23, [#allocation5]  }
  0x16   :  { %189 = dma.done.wait [#allocation5], 128  }
  0x17   :  { %190 = vsyncadd [#allocation5], 4294967168 }
  0x18   :  { %101 = vsyncpa [#allocation4], 1 }
  0x19   :  { %102 = vsyncpa [#allocation7], 1 }
  0x1a   :  { %103 = vsyncpa [#allocation5], 1 }

</bundles_post_ra>
